<compile_context>
chip_gen: v5e
topology: v5e:2x2
jax: 0.10.0
libtpu: 0.0.40
codegen_flags: <defaults>
</compile_context>

<pallas_src>
import jax
import jax.numpy as jnp
from jax import lax
from jax.experimental import pallas as pl
from jax.experimental.pallas import tpu as pltpu


def _round_up(x, m):
    return ((x + m - 1) // m) * m


# ---------------------------------------------------------------------------
# Kernel 1: module-semantics forward on already-gathered embeddings.
# ---------------------------------------------------------------------------
def _complex_forward_kernel(lhs_ref, rel_ref, out_ref):
    rank = lhs_ref.shape[-1] // 2
    l0 = lhs_ref[:, :rank]
    l1 = lhs_ref[:, rank:]
    r0 = rel_ref[:, :rank]
    r1 = rel_ref[:, rank:]
    out_ref[:, :rank] = l0 * r0 - l1 * r1
    out_ref[:, rank:] = l0 * r1 + l1 * r0


def _pick_block_b(B, D, itemsize, vmem_budget_bytes=16 * 1024 * 1024):
    """Largest batch tile (multiple of 8) fitting a double-buffered VMEM budget,
    while keeping >= 2 grid steps so both v7x TensorCores get work."""
    per_row = 3 * 2 * D * itemsize            # (lhs + rel + out) x 2 pipeline buffers
    cap = max(8, (vmem_budget_bytes // per_row) // 8 * 8)
    bb = min(cap, 1024, _round_up(B, 8))
    if B > 8:
        bb = min(bb, max(8, _round_up(pl.cdiv(B, 2), 8)))
    else:
        bb = B                                # block == full array dim (allowed)
    return bb


def complex_forward(lhs, rel, *, block_b=None):
    """Complex.forward(lhs, rel) for [B, 2*rank] inputs."""
    B, D = lhs.shape
    assert rel.shape == (B, D)
    assert D % 256 == 0, "2*rank must keep real/imag halves lane-aligned (rank % 128 == 0)"
    if block_b is None:
        block_b = _pick_block_b(B, D, lhs.dtype.itemsize)
    grid = (pl.cdiv(B, block_b),)
    return pl.pallas_call(
        _complex_forward_kernel,
        out_shape=jax.ShapeDtypeStruct((B, D), lhs.dtype),
        grid_spec=pl.GridSpec(
            grid=grid,
            in_specs=[
                pl.BlockSpec((block_b, D), lambda i: (i, 0)),
                pl.BlockSpec((block_b, D), lambda i: (i, 0)),
            ],
            out_specs=pl.BlockSpec((block_b, D), lambda i: (i, 0)),
        ),
        compiler_params=pltpu.CompilerParams(
            dimension_semantics=("parallel",),
            vmem_limit_bytes=32 * 1024 * 1024,
        ),
    )(lhs, rel)


# ---------------------------------------------------------------------------
# Kernel 2: gather-fused forward — reads embedding rows straight from HBM
# (scalar-prefetched indices + manual per-row DMA), avoiding the intermediate
# [B, D] lhs/rel arrays in HBM.
# ---------------------------------------------------------------------------
def _complex_fused_kernel(lhs_idx_ref, rel_idx_ref,        # SMEM (scalar prefetch)
                          ent_hbm, rel_hbm,                # HBM refs (pl.ANY)
                          out_ref,                         # (block_b, D) VMEM
                          lhs_buf, rel_buf, sems):         # scratch
    block_b, D = out_ref.shape
    rank = D // 2
    base = pl.program_id(0) * block_b

    def _start(r, carry):
        li = lhs_idx_ref[base + r]
        ri = rel_idx_ref[base + r]
        pltpu.make_async_copy(ent_hbm.at[li], lhs_buf.at[r], sems.at[0, r]).start()
        pltpu.make_async_copy(rel_hbm.at[ri], rel_buf.at[r], sems.at[1, r]).start()
        return carry

    lax.fori_loop(0, block_b, _start, 0)

    def _wait(r, carry):
        pltpu.make_async_copy(ent_hbm.at[0], lhs_buf.at[r], sems.at[0, r]).wait()
        pltpu.make_async_copy(rel_hbm.at[0], rel_buf.at[r], sems.at[1, r]).wait()
        return carry

    lax.fori_loop(0, block_b, _wait, 0)

    l0 = lhs_buf[:, :rank]
    l1 = lhs_buf[:, rank:]
    r0 = rel_buf[:, :rank]
    r1 = rel_buf[:, rank:]
    out_ref[:, :rank] = l0 * r0 - l1 * r1
    out_ref[:, rank:] = l0 * r1 + l1 * r0


def complex_forward_fused(ent_embedding, rel_embedding, lhs_idx, rel_idx, *, block_b=32):
    """Fused embedding-gather + Complex.forward: out[i] = complex_mul(E[lhs_idx[i]], R[rel_idx[i]])."""
    num_ents, D = ent_embedding.shape
    num_rels, D2 = rel_embedding.shape
    assert D == D2 and D % 256 == 0
    B = lhs_idx.shape[0]
    B_pad = _round_up(B, block_b)
    # Pad indices with 0 (a valid row); padded outputs are sliced off below.
    lhs_idx_p = jnp.zeros((B_pad,), jnp.int32).at[:B].set(lhs_idx.astype(jnp.int32))
    rel_idx_p = jnp.zeros((B_pad,), jnp.int32).at[:B].set(rel_idx.astype(jnp.int32))
    grid = (B_pad // block_b,)

    out = pl.pallas_call(
        _complex_fused_kernel,
        out_shape=jax.ShapeDtypeStruct((B_pad, D), ent_embedding.dtype),
        grid_spec=pltpu.PrefetchScalarGridSpec(
            num_scalar_prefetch=2,
            grid=grid,
            in_specs=[
                pl.BlockSpec(memory_space=pl.ANY),   # entity table stays in HBM
                pl.BlockSpec(memory_space=pl.ANY),   # relation table stays in HBM
            ],
            out_specs=pl.BlockSpec((block_b, D), lambda i, li, ri: (i, 0)),
            scratch_shapes=[
                pltpu.VMEM((block_b, D), ent_embedding.dtype),
                pltpu.VMEM((block_b, D), rel_embedding.dtype),
                pltpu.SemaphoreType.DMA((2, block_b)),
            ],
        ),
        compiler_params=pltpu.CompilerParams(
            dimension_semantics=("parallel",),
            vmem_limit_bytes=32 * 1024 * 1024,
        ),
    )(lhs_idx_p, rel_idx_p, ent_embedding, rel_embedding)
    return out[:B]


if __name__ == "__main__":
    # Small shapes consistent with Complex.__init__ (rank = dim // 2).
    num_ents = 512
    num_rels = 64
    dim_ent_embedding = 256          # => rank = 128
    dim_rel_embedding = 256
    init_size = 0.001
    batch = 64                       # gives a 2-step parallel grid

    key = jax.random.PRNGKey(0)
    k_ent, k_rel, k_li, k_ri = jax.random.split(key, 4)

    # Deterministic parameter init (mirrors nn.Embedding N(0,1) * init_size)
    ent_embedding = jax.random.normal(
        k_ent, (num_ents, dim_ent_embedding), dtype=jnp.float32) * init_size
    rel_embedding = jax.random.normal(
        k_rel, (num_rels, dim_rel_embedding), dtype=jnp.float32) * init_size

    lhs_idx = jax.random.randint(k_li, (batch,), 0, num_ents)
    rel_idx = jax.random.randint(k_ri, (batch,), 0, num_rels)
    lhs = ent_embedding[lhs_idx]     # [B, 2*rank]
    rel = rel_embedding[rel_idx]     # [B, 2*rank]

    # Pure-JAX reference
    rank = dim_ent_embedding // 2
    l0, l1 = lhs[:, :rank], lhs[:, rank:]
    r0, r1 = rel[:, :rank], rel[:, rank:]
    ref = jnp.concatenate([l0 * r0 - l1 * r1, l0 * r1 + l1 * r0], axis=-1)

    # 1) Module-semantics kernel on gathered embeddings
    out = jax.block_until_ready(complex_forward(lhs, rel))
    assert out.shape == (batch, dim_ent_embedding)
    assert jnp.allclose(out, ref, atol=1e-6, rtol=1e-6)

    # 2) Gather-fused kernel reading the tables directly from HBM
    out_fused = jax.block_until_ready(
        complex_forward_fused(ent_embedding, rel_embedding, lhs_idx, rel_idx))
    assert out_fused.shape == (batch, dim_ent_embedding)
    assert jnp.allclose(out_fused, ref, atol=1e-6, rtol=1e-6)

    print("KERNEL_OK")
</pallas_src>

<mosaic_0001>
module attributes {stable_mosaic.version = 11 : i64} {
  func.func @_complex_forward_kernel(%arg0: i32, %arg1: memref<32x256xf32, #tpu.memory_space<vmem>>, %arg2: memref<32x256xf32, #tpu.memory_space<vmem>>, %arg3: memref<32x256xf32, #tpu.memory_space<vmem>>) attributes {dimension_semantics = [#tpu.dimension_semantics<parallel>], iteration_bounds = array<i64: 2>, scalar_prefetch = 0 : i64, scratch_operands = 0 : i64, tpu.core_type = #tpu.core_type<tc>, window_params = [{transform_indices = @transform_0, window_bounds = array<i64: 32, 256>}, {transform_indices = @transform_1, window_bounds = array<i64: 32, 256>}, {transform_indices = @transform_2, window_bounds = array<i64: 32, 256>}]} {
    %c0 = arith.constant 0 : index
    %c0_0 = arith.constant 0 : index
    %0 = vector.load %arg1[%c0, %c0_0] : memref<32x256xf32, #tpu.memory_space<vmem>>, vector<32x128xf32>
    %c0_1 = arith.constant 0 : index
    %c128 = arith.constant 128 : index
    %1 = vector.load %arg1[%c0_1, %c128] : memref<32x256xf32, #tpu.memory_space<vmem>>, vector<32x128xf32>
    %c0_2 = arith.constant 0 : index
    %c0_3 = arith.constant 0 : index
    %2 = vector.load %arg2[%c0_2, %c0_3] : memref<32x256xf32, #tpu.memory_space<vmem>>, vector<32x128xf32>
    %c0_4 = arith.constant 0 : index
    %c128_5 = arith.constant 128 : index
    %3 = vector.load %arg2[%c0_4, %c128_5] : memref<32x256xf32, #tpu.memory_space<vmem>>, vector<32x128xf32>
    %4 = arith.mulf %0, %2 : vector<32x128xf32>
    %5 = arith.mulf %1, %3 : vector<32x128xf32>
    %6 = arith.subf %4, %5 : vector<32x128xf32>
    %c0_6 = arith.constant 0 : index
    %c0_7 = arith.constant 0 : index
    %7 = vector.load %arg3[%c0_6, %c0_7] : memref<32x256xf32, #tpu.memory_space<vmem>>, vector<32x128xf32>
    tpu.vector_store %arg3[%c0_6, %c0_7], %6 {strides = array<i32>} : memref<32x256xf32, #tpu.memory_space<vmem>>, vector<32x128xf32>,
    %8 = arith.mulf %0, %3 : vector<32x128xf32>
    %9 = arith.mulf %1, %2 : vector<32x128xf32>
    %10 = arith.addf %8, %9 : vector<32x128xf32>
    %c0_8 = arith.constant 0 : index
    %c128_9 = arith.constant 128 : index
    %11 = vector.load %arg3[%c0_8, %c128_9] : memref<32x256xf32, #tpu.memory_space<vmem>>, vector<32x128xf32>
    tpu.vector_store %arg3[%c0_8, %c128_9], %10 {strides = array<i32>} : memref<32x256xf32, #tpu.memory_space<vmem>>, vector<32x128xf32>,
    return
  }
  func.func @transform_0(%arg0: i32) -> (i32, i32) {
    %c0_i32 = arith.constant 0 : i32
    %c0_i32_0 = arith.constant 0 : i32
    return %arg0, %c0_i32 : i32, i32
  }
  func.func @transform_1(%arg0: i32) -> (i32, i32) {
    %c0_i32 = arith.constant 0 : i32
    %c0_i32_0 = arith.constant 0 : i32
    return %arg0, %c0_i32 : i32, i32
  }
  func.func @transform_2(%arg0: i32) -> (i32, i32) {
    %c0_i32 = arith.constant 0 : i32
    %c0_i32_0 = arith.constant 0 : i32
    return %arg0, %c0_i32 : i32, i32
  }
}

</mosaic_0001>

<bundles_post_ra>
// kernel: tpu_custom_call.1
= control target key start
LH: loop header
LB: loop body
LE: loop exit
PB: predicated region body
PF: predicated region fallthrough
CT: control target
= control target key end

     0   :  { %7 = vsyncpa [#allocation3], 0  ;;  %s798_s0 = inlined_call_operand.hbm [shape: f32[64,256], index: 0, kind: input, shape index: {}]   ;;  %s799_s1 = inlined_call_operand.hbm [shape: f32[64,256], index: 1, kind: input, shape index: {}]   ;;  %s800_s2 = inlined_call_operand.hbm [shape: f32[64,256], index: 2, kind: output, shape index: {}]  }
   0x1   :  { %9 = vsyncpa [#allocation3 + $0x1], 0 }
   0x2   :  { %10 = vsyncpa [#allocation6], 0 }
   0x3   :  { %12 = vsyncpa [#allocation6 + $0x1], 0 }
   0x4   :  { %13 = vsyncpa [#allocation4], 0 }
   0x5   :  { %15 = vsyncpa [#allocation4 + $0x1], 0  ;;  %s605_s9 = smov 0   ;;  %s607_s10 = smov 0  }
   0x6   :  { %s609_s11 = smov 0   ;;  %s611_s12 = smov 0  }
   0x7 LB: > { %s626_s13 = sadd.s32 4294967295, %s584_s12   ;;  %s372_s14 = sadd.s32 4294967294, %s584_s12   ;;  %s584_s12 = sphi %s611_s12, %s811_s12   ;;  %s580_s11 = sphi %s609_s11, %s810_s11   ;;  %s576_s10 = sphi %s607_s10, %s809_s10   ;;  %s572_s9 = sphi %s605_s9, %s808_s9  }
   0x8   : > { %s630_s15 = sadd.s32 1, %s584_s12   ;;  %s28_s16 = sadd.s32 1, %s580_s11 }
   0x9   : > { %s25_s17 = ssub.s32 %s584_s12, %s630_s15  ;;  %p35_p0 = scmp.ne.s32.totalorder %s580_s11, %s576_s10 }
   0xa   : > { %p26_p1 = scmp.eq.s32.totalorder %s25_s17, 0  ;;  %p36_p2 = scmp.eq.s32.totalorder %s584_s12, 0 }
   0xb   : > { %p41_p3 = scmp.ne.s32.totalorder %s576_s10, %s572_s9  ;;  %p42_p4 = scmp.eq.s32.totalorder %s626_s13, 0 }
   0xc   : > { %s642_s18 = scalar_select %p26_p1, %s580_s11, %s28_s16  }
   0xd   : > { %p644_p5 = por %p36_p2, %p35_p0  ;;  %p648_p6 = por %p42_p4, %p41_p3 }
   0xe   : > { %p91_p7 = scmp.eq.s32.totalorder %s626_s13, 1  ;;  %p97_p8 = scmp.eq.s32.totalorder %s372_s14, 1 }
   0xf   : > { %p416_p10 = scmp.lt.s32.totalorder %s584_s12, 2  ;;  %s664_s23 = sand.u32 1, %s580_s11  }
  0x10   : > { %p655_p11 = por %p91_p7, %p35_p0  ;;  %p659_p12 = por %p97_p8, %p41_p3 }
  0x11   : > { %s394_s24 = sshll.u32 %s584_s12, 6  ;;  %s375_s25 = sshll.u32 %s664_s23, 6 }
  0x12   : > { %s127_s28 = scalar_lea.hbm %s798_s0, %s394_s24  ;;  %s121_s30 = scalar_lea.vmem [#allocation2], %s375_s25 }
  0x13   : > { %s128_s29 = sshll.u32 %s127_s28, 4  ;;  %s130_s3 = sshll.u32 %s121_s30, 4  ;;  %s129_s29 = int_to_ptr.hbm [resolvable:$true] %s128_s29  ;;  %s131_s3 = int_to_ptr.vmem [resolvable:$true] %s130_s3 }
  0x14   : > { %p677_p13 = pnand %p416_p10, %p644_p5  ;;  %p383_p0 = scmp.ge.s32.totalorder %s584_s12, 1 }
  0x15   : > { %p161_p1 = scmp.lt.s32.totalorder %s584_s12, 3  ;;  %s118_s5 = scalar_lea.sflag [#allocation3], %s664_s23 }
  0x16   : > { %s454_s6 = sshra.s32 %s129_s29, 4  ;;  %p458_p3 = pneg %p677_p13  ;;  %s455_s6 = int_to_ptr.hbm [resolvable:$true] %s454_s6 }
  0x17   : > { %s456_s7 = scalar_lea.hbm %s455_s6, 64  ;;  %s461_s16 = scalar_lea.hbm %s798_s0, 128 }
  0x18   : > { %p457_p2 = scmp.ne.s32.totalorder %s455_s6, %s456_s7  ;;  %p462_p5 = scmp.lt.s32.totalorder %s455_s6, %s798_s0 }
  0x19   : > { %p463_p8 = scmp.lt.s32.totalorder %s461_s16, %s456_s7 }
  0x1a   : > { %p459_p4 = pnand %p458_p3, %p457_p2 }
  0x1b   : > { %p464_p10 = por %p463_p8, %p462_p5 }
  0x1c   : > { %p460_p7 = pneg %p459_p4 }
  0x1e   : > { %p465_p9 = pnand %p464_p10, %p460_p7 }
  0x20   : > { %468 = shalt.err (!%p465_p9)
}
  0x21   : > { %s586_s26 = smov 256   ;;  %s587_s27 = smov 16  }
  0x22   : > { %408 = dma.hbm_to_vmem [thread:$0]  (!%p677_p13), %s129_s29, 1024, %s131_s3, %s118_s5, %s586_s26, %s586_s26, %s587_s27  }
  0x23   : > { %p701_p2 = pnand %p383_p0, %p161_p1  ;;  %s150_s7 = scalar_lea.hbm %s799_s1, %s394_s24 }
  0x24   : > { %s151_s8 = sshll.u32 %s150_s7, 4  ;;  %s144_s14 = scalar_lea.vmem [#allocation5], %s375_s25  ;;  %s152_s8 = int_to_ptr.hbm [resolvable:$true] %s151_s8 }
  0x25   : > { %s153_s16 = sshll.u32 %s144_s14, 4  ;;  %s141_s17 = scalar_lea.sflag [#allocation6], %s664_s23  ;;  %s154_s16 = int_to_ptr.vmem [resolvable:$true] %s153_s16 }
  0x26   : > { %s484_s19 = sshra.s32 %s152_s8, 4  ;;  %s491_s30 = scalar_lea.hbm %s799_s1, 128  ;;  %s485_s19 = int_to_ptr.hbm [resolvable:$true] %s484_s19 }
  0x27   : > { %s486_s29 = scalar_lea.hbm %s485_s19, 64  ;;  %p492_p4 = scmp.lt.s32.totalorder %s485_s19, %s799_s1 }
  0x28   : > { %p487_p9 = scmp.ne.s32.totalorder %s485_s19, %s486_s29  ;;  %p493_p7 = scmp.lt.s32.totalorder %s491_s30, %s486_s29 }
  0x2a   : > { %p489_p0 = pnand %p487_p9, %p458_p3  ;;  %p494_p5 = por %p493_p7, %p492_p4 }
  0x2c   : > { %p490_p1 = pneg %p489_p0 }
  0x2e   : > { %p495_p8 = pnand %p494_p5, %p490_p1 }
  0x30   : > { %498 = shalt.err (!%p495_p8)
}
  0x31   : > { %411 = dma.hbm_to_vmem [thread:$0]  (!%p677_p13), %s152_s8, 1024, %s154_s16, %s141_s17, %s586_s26, %s586_s26, %s587_s27  }
  0x32   : > { %165 = sbr.rel (%p701_p2) target bundleno = 75 (0x4b), region = 28  ;;  %s727_s23 = sand.u32 (!%p701_p2), 1, %s576_s10  }
  0x33   : > { %s730_s25 = sshll.u32 (!%p701_p2), %s727_s23, 6  ;;  %s168_s7 = scalar_lea.sflag (!%p701_p2), [#allocation3], %s727_s23 }
  0x34   : > { %s734_s14 = scalar_lea.vmem (!%p701_p2), [#allocation2], %s730_s25 }
  0x37   : > { %559 = dma.done.wait (%p648_p6), %s168_s7, 1024  }
  0x38   : > { %561 = vsyncadd (%p648_p6), %s168_s7, 4294966272  ;;  %s178_s4 = scalar_lea.sflag [#allocation6], %s727_s23  ;;  %s742_s26 = scalar_lea.vmem [#allocation5], %s730_s25 }
  0x39   : > { %563 = dma.done.wait (%p648_p6), %s178_s4, 1024  }
  0x3a   : > { %565 = vsyncadd (%p648_p6), %s178_s4, 4294966272  ;;  %v211_v0 = vld [vmem:[%s734_s14] sm:$0xff]  ;;  %v215_v1 = vld [vmem:[%s734_s14 + $0x8] sm:$0xff]  ;;  %s398_s20 = sshll.u32 %s626_s13, 6  ;;  %s207_s8 = scalar_lea.vmem [#allocation7], %s730_s25 }
  0x3b   : > { %v219_v2 = vld [vmem:[%s742_s26] sm:$0xff]  ;;  %v223_v3 = vld [vmem:[%s742_s26 + $0x8] sm:$0xff]  ;;  %v212_v5 = vld [vmem:[%s734_s14 + $0x10] sm:$0xff]  ;;  %s272_s28 = scalar_lea.hbm %s800_s2, %s398_s20  ;;  %s273_s16 = sshll.u32 %s207_s8, 4  ;;  %s274_s16 = int_to_ptr.vmem [resolvable:$true] %s273_s16 }
  0x3c   : > { %v227_v4 = vmul.f32 %v219_v2, %v211_v0  ;;  %v216_v6 = vld [vmem:[%s734_s14 + $0x18] sm:$0xff]  ;;  %v247_v7 = vmul.f32 %v219_v2, %v215_v1  ;;  %v231_v8 = vmul.f32 %v223_v3, %v215_v1  ;;  %v220_v9 = vld [vmem:[%s742_s26 + $0x10] sm:$0xff]  ;;  %v213_v11 = vld [vmem:[%s734_s14 + $0x20] sm:$0xff]  ;;  %v243_v12 = vmul.f32 %v223_v3, %v211_v0  ;;  %s275_s17 = sshll.u32 %s272_s28, 4  ;;  %s260_s19 = scalar_lea.sflag [#allocation4], %s727_s23  ;;  %s276_s17 = int_to_ptr.hbm [resolvable:$true] %s275_s17 }
  0x3d   : > { %v224_v10 = vld [vmem:[%s742_s26 + $0x18] sm:$0xff]  ;;  %v228_v13 = vmul.f32 %v220_v9, %v212_v5  ;;  %v217_v15 = vld [vmem:[%s734_s14 + $0x28] sm:$0xff]  ;;  %v221_v16 = vld [vmem:[%s742_s26 + $0x20] sm:$0xff]  ;;  %v248_v19 = vmul.f32 %v220_v9, %v216_v6  ;;  %s528_s29 = sshra.s32 %s276_s17, 4  ;;  %s534_s24 = scalar_lea.hbm %s800_s2, 128  ;;  %s529_s29 = int_to_ptr.hbm [resolvable:$true] %s528_s29 }
  0x3e   : > { %v232_v14 = vmul.f32 %v224_v10, %v216_v6  ;;  %v225_v17 = vld [vmem:[%s742_s26 + $0x28] sm:$0xff]  ;;  %v244_v18 = vmul.f32 %v224_v10, %v212_v5  ;;  %v235_v20 = vsub.f32 %v227_v4, %v231_v8  ;;  %v229_v21 = vmul.f32 %v221_v16, %v213_v11  ;;  %v214_v23 = vld [vmem:[%s734_s14 + $0x30] sm:$0xff]  ;;  %v218_v24 = vld [vmem:[%s734_s14 + $0x38] sm:$0xff]  ;;  %s530_s3 = scalar_lea.hbm %s529_s29, 64  ;;  %p535_p10 = scmp.lt.s32.totalorder %s529_s29, %s800_s2 }
  0x3f   : > { %v233_v22 = vmul.f32 %v225_v17, %v217_v15  ;;  %v222_v25 = vld [vmem:[%s742_s26 + $0x30] sm:$0xff]  ;;  %v226_v27 = vld [vmem:[%s742_s26 + $0x38] sm:$0xff]  ;;  %v251_v29 = vadd.f32 %v247_v7, %v243_v12  ;;  %v245_v30 = vmul.f32 %v225_v17, %v213_v11  ;;  %v249_v33 = vmul.f32 %v221_v16, %v217_v15  ;;  %p531_p6 = scmp.ne.s32.totalorder %s529_s29, %s530_s3  ;;  %p536_p2 = scmp.lt.s32.totalorder %s534_s24, %s530_s3 }
  0x40   : > { %v236_v26 = vsub.f32 %v228_v13, %v232_v14  ;;  %v230_v28 = vmul.f32 %v222_v25, %v214_v23  ;;  %239 = vst [vmem:[%s207_s8] sm:$0xff] %v235_v20  ;;  %v234_v32 = vmul.f32 %v226_v27, %v218_v24  ;;  %v246_v34 = vmul.f32 %v226_v27, %v214_v23 }
  0x41   : > { %v237_v31 = vsub.f32 %v229_v21, %v233_v22  ;;  %v252_v35 = vadd.f32 %v248_v19, %v244_v18  ;;  %v250_v36 = vmul.f32 %v222_v25, %v218_v24  ;;  %v253_v38 = vadd.f32 %v249_v33, %v245_v30  ;;  %255 = vst [vmem:[%s207_s8 + $0x8] sm:$0xff] %v251_v29  ;;  %p532_p13 = pnand %p531_p6, %p655_p11  ;;  %p537_p9 = por %p536_p2, %p535_p10 }
  0x42   : > { %240 = vst [vmem:[%s207_s8 + $0x10] sm:$0xff] %v236_v26  ;;  %v238_v37 = vsub.f32 %v230_v28, %v234_v32 }
  0x43   : > { %241 = vst [vmem:[%s207_s8 + $0x20] sm:$0xff] %v237_v31  ;;  %v254_v39 = vadd.f32 %v250_v36, %v246_v34  ;;  %p533_p3 = pneg %p532_p13 }
  0x44   : > { %242 = vst [vmem:[%s207_s8 + $0x30] sm:$0xff] %v238_v37 }
  0x45   : > { %256 = vst [vmem:[%s207_s8 + $0x18] sm:$0xff] %v252_v35  ;;  %p538_p0 = pnand %p537_p9, %p533_p3 }
  0x46   : > { %257 = vst [vmem:[%s207_s8 + $0x28] sm:$0xff] %v253_v38 }
  0x47   : > { %258 = vst [vmem:[%s207_s8 + $0x38] sm:$0xff] %v254_v39 }
  0x48   : > { %541 = shalt.err (!%p538_p0)
}
  0x49   : > { %s588_s23 = smov 256   ;;  %s589_s7 = smov 16  }
  0x4a   : > { %403 = dma.vmem_to_hbm [thread:$0]  (%p655_p11), %s274_s16, 1024, %s276_s17, %s260_s19, %s588_s23, %s588_s23, %s589_s7  }
  0x4b PF: > { %s290_s14 = sand.u32 1, %s572_s9   ;;  %p807_p1 = scmp.ge.s32.totalorder %s584_s12, 2 }
  0x4c   : > { %s291_s4 = scalar_lea.sflag [#allocation4], %s290_s14 }
  0x4d   : > { %p413_p4 = pnand %p807_p1, %p659_p12 }
  0x4f   : > { %p414_p7 = pneg %p413_p4 }
  0x51   : > { %567 = dma.done.wait (%p414_p7), %s291_s4, 1024  }
  0x52   : > { %569 = vsyncadd (%p414_p7), %s291_s4, 4294966272  ;;  %p18_p5 = scmp.ge.s32.totalorder %s630_s15, 4   ;;  %s808_s9 = smov %s576_s10 }
  0x53   : > { %s809_s10 = smov %s580_s11  ;;  %s810_s11 = smov %s642_s18 }
  0x54   : > { %s811_s12 = smov %s630_s15  ;;  %20 = sbr.rel (!%p18_p5) target bundleno = 7 (0x7), region = 86 }
  0x59   :  { %297 = vsyncpa [#allocation3], 1 }
  0x5a   :  { %299 = vsyncpa [#allocation3 + $0x1], 1 }
  0x5b   :  { %300 = vsyncpa [#allocation6], 1 }
  0x5c   :  { %302 = vsyncpa [#allocation6 + $0x1], 1 }
  0x5d   :  { %303 = vsyncpa [#allocation4], 1 }
  0x5e   :  { %305 = vsyncpa [#allocation4 + $0x1], 1 }

</bundles_post_ra>
